<compile_context>
chip_gen: v6e
topology: v6e:2x2x1
jax: 0.10.0
libtpu: 0.0.40
codegen_flags: <defaults>
</compile_context>

<pallas_src>
import functools

import jax
import jax.numpy as jnp
import numpy as np
from jax.experimental import pallas as pl
from jax.experimental.pallas import tpu as pltpu

# ---- config (mirrors the .ini values the PyTorch module reads) ----
MIN_GRAM = 2
MAX_GRAM = 4
N_GRAMS = MAX_GRAM - MIN_GRAM + 1
FILTERS = 16                                   # net.filters
VEC_SIZE = 32                                  # data.vec_size
BATCH = 2                                      # data.batch_size
SENT_NUM = 2                                   # data.sentence_num
SENT_LEN = 8                                   # data.sentence_len
SEQ_LEN = SENT_NUM * SENT_LEN                  # L = 16
FEATURES = N_GRAMS * FILTERS                   # 48
K_DIM = MAX_GRAM * VEC_SIZE                    # 128 = im2col contraction depth
OUT_PAD = 128                                  # lane-dense padded output width
NEG_INF = float("-inf")


def _fused_kernel(x_ref, w_ref, mb_ref, o_ref):
    """
    x_ref : (Bt*L, V)   f32   batch collapsed into sublanes
    w_ref : (4V, 128)   bf16  im2col-packed conv weights (zero rows for shift>=g,
                              zero columns FEATURES..127)
    mb_ref: (L, 128)    f32   per-gram bias on valid time rows, -inf on masked rows
    o_ref : (Bt, 128)   f32   lane-dense output; columns [:FEATURES] are valid
    """
    x = x_ref[...]                                            # (Bt*L, V) f32
    bl = x.shape[0]

    # --- in-kernel im2col ---------------------------------------------------
    # Column block [i*V:(i+1)*V] of row r holds x[r+i].  Rows past the valid
    # window (t >= L-g+1, incl. cross-batch leakage) are garbage but are killed
    # by the -inf time mask before the max.  Zero-pad + offset slices lower to
    # XLU sublane rotates (same unit as pltpu.roll), off the VPU.
    tail = jnp.zeros((MAX_GRAM - 1, VEC_SIZE), x.dtype)
    x_pad = jnp.concatenate([x, tail], axis=0)                # (Bt*L + 3, V)
    pieces = [x_pad[i:i + bl, :] for i in range(MAX_GRAM)]
    x_win = jnp.concatenate(pieces, axis=1).astype(jnp.bfloat16)   # (Bt*L, 128)

    # --- single bf16 MXU pass: K=128, N=128, f32 accumulation ---------------
    y = jnp.dot(x_win, w_ref[...], preferred_element_type=jnp.float32)  # (Bt*L, 128)

    # --- epilogue: bias + time mask, max over time, ReLU ---------------------
    bt = bl // SEQ_LEN
    y = y.reshape(bt, SEQ_LEN, OUT_PAD) + mb_ref[...][None, :, :]
    # relu(max_t(.)) == max_t(relu(.)) since ReLU is monotone; masked rows are -inf.
    o_ref[...] = jnp.maximum(jnp.max(y, axis=1), 0.0)         # (Bt, 128) lane-dense store


def pack_params(weights, biases):
    """Once-per-model packing (hoisted out of the forward path).

    Returns:
      w_packed : (4*V, 128) bf16 — rows [i*V:(i+1)*V], cols [gi*F:(gi+1)*F] hold
                 weights[gi][i]; zero rows for shift i >= gram, zero pad columns.
      maskbias : (L, 128) f32   — bias[gi] on rows t < L-gram+1, -inf otherwise;
                 zeros in the pad columns.
    """
    w = np.zeros((K_DIM, OUT_PAD), np.float32)
    mb = np.zeros((SEQ_LEN, OUT_PAD), np.float32)
    for gi, gram in enumerate(range(MIN_GRAM, MAX_GRAM + 1)):
        wg = np.asarray(weights[gi], np.float32)              # (gram, V, F)
        bg = np.asarray(biases[gi], np.float32).reshape(FILTERS)
        col = gi * FILTERS
        for i in range(gram):
            w[i * VEC_SIZE:(i + 1) * VEC_SIZE, col:col + FILTERS] = wg[i]
        t_valid = SEQ_LEN - gram + 1
        mb[:t_valid, col:col + FILTERS] = bg[None, :]
        mb[t_valid:, col:col + FILTERS] = NEG_INF
    return jnp.asarray(w, jnp.bfloat16), jnp.asarray(mb, jnp.float32)


def _pick_batch_tile(batch):
    """>=512 sublane rows per grid step amortizes the ~0.35us/step overhead and
    lets v7x shard the parallel batch axis across both TensorCores."""
    target = max(8, 512 // SEQ_LEN)            # 32 batches -> 512 rows of (Bt*L, V)
    if batch <= target or batch % target:
        return batch                           # single grid step (block == full array)
    return target


@functools.partial(jax.jit, static_argnames=("b_tile",))
def cnn_encoder_forward(x, w_packed, maskbias, b_tile=None):
    """x: (B, SENT_NUM, SENT_LEN, V) -> (B, FEATURES).  (doc_len unused, as in torch.)"""
    batch = x.shape[0]
    if b_tile is None:
        b_tile = _pick_batch_tile(batch)

    # torch .view equivalent: collapse sentences & batch into sublanes (free reshape).
    x2d = x.reshape(batch * SEQ_LEN, VEC_SIZE).astype(jnp.float32)

    out_pad = pl.pallas_call(
        _fused_kernel,
        out_shape=jax.ShapeDtypeStruct((batch, OUT_PAD), jnp.float32),
        grid=(batch // b_tile,),
        in_specs=[
            pl.BlockSpec((b_tile * SEQ_LEN, VEC_SIZE), lambda i: (i, 0)),
            pl.BlockSpec((K_DIM, OUT_PAD), lambda i: (0, 0)),     # resident across steps
            pl.BlockSpec((SEQ_LEN, OUT_PAD), lambda i: (0, 0)),   # resident across steps
        ],
        out_specs=pl.BlockSpec((b_tile, OUT_PAD), lambda i: (i, 0)),
        compiler_params=pltpu.CompilerParams(dimension_semantics=("parallel",)),
    )(x2d, w_packed, maskbias)

    # The lane-padded (B, 128) is the kernel's natural layout; this slice fuses
    # into the same jit (consumers accepting the padded form can skip it).
    return out_pad[:, :FEATURES]


def init_params(key):
    """Deterministic Conv2d(1, FILTERS, (g, VEC_SIZE)) params, stored as (g, V, F) / (1, F)."""
    weights, biases = [], []
    for gram in range(MIN_GRAM, MAX_GRAM + 1):
        key, kw, kb = jax.random.split(key, 3)
        fan_in = gram * VEC_SIZE
        bound = 1.0 / np.sqrt(fan_in)
        w = jax.random.uniform(kw, (gram, VEC_SIZE, FILTERS), jnp.float32, -bound, bound)
        b = jax.random.uniform(kb, (1, FILTERS), jnp.float32, -bound, bound)
        weights.append(w)
        biases.append(b)
    return weights, biases


def reference_forward(x, weights, biases):
    """Pure-JAX reference of the PyTorch forward.  x and W are quantized to bf16
    (matching the kernel's MXU operand precision); all accumulation is f32."""
    batch = x.shape[0]
    x3 = x.reshape(batch, SEQ_LEN, VEC_SIZE).astype(jnp.float32)
    x3 = x3.astype(jnp.bfloat16).astype(jnp.float32)
    outs = []
    for gi, gram in enumerate(range(MIN_GRAM, MAX_GRAM + 1)):
        w = weights[gi].astype(jnp.bfloat16).astype(jnp.float32)
        t_valid = SEQ_LEN - gram + 1
        windows = jnp.stack([x3[:, i:i + t_valid, :] for i in range(gram)], axis=2)  # (B,T,g,V)
        y = jnp.einsum('btgv,gvf->btf', windows, w,
                       precision=jax.lax.Precision.HIGHEST)
        y = y + biases[gi].reshape(1, 1, FILTERS)
        y = jnp.maximum(y, 0.0)
        outs.append(jnp.max(y, axis=1))
    return jnp.concatenate(outs, axis=1)


if __name__ == "__main__":
    key = jax.random.PRNGKey(0)
    key, kx = jax.random.split(key)
    # Input as fed to the PyTorch module before its .view:
    # (batch, sentence_num, sentence_len, vec_size)
    x = jax.random.normal(kx, (BATCH, SENT_NUM, SENT_LEN, VEC_SIZE), jnp.float32)
    weights, biases = init_params(key)

    # Hoisted: packing happens exactly once (init time), not per forward call.
    w_packed, maskbias = pack_params(weights, biases)

    out = cnn_encoder_forward(x, w_packed, maskbias)
    out = jax.block_until_ready(out)

    ref = reference_forward(x, weights, biases)
    assert out.shape == (BATCH, FEATURES), out.shape
    # Kernel and reference use identical bf16-rounded operands with f32 accumulation;
    # only accumulation order differs, so a tight tolerance still holds.
    np.testing.assert_allclose(np.asarray(out), np.asarray(ref), rtol=1e-3, atol=1e-3)

    print("KERNEL_OK")
</pallas_src>

<mosaic_0001>
module attributes {stable_mosaic.version = 11 : i64} {
  func.func @_fused_kernel(%arg0: i32, %arg1: memref<32x32xf32, #tpu.memory_space<vmem>>, %arg2: memref<128x128xbf16, #tpu.memory_space<vmem>>, %arg3: memref<16x128xf32, #tpu.memory_space<vmem>>, %arg4: memref<2x128xf32, #tpu.memory_space<vmem>>) attributes {dimension_semantics = [#tpu.dimension_semantics<parallel>], iteration_bounds = array<i64: 1>, scalar_prefetch = 0 : i64, scratch_operands = 0 : i64, tpu.core_type = #tpu.core_type<tc>, window_params = [{transform_indices = @transform_0, window_bounds = array<i64: 32, 32>}, {pipeline_mode = #tpu.pipeline_mode<synchronous>, transform_indices = @transform_1, window_bounds = array<i64: 128, 128>}, {pipeline_mode = #tpu.pipeline_mode<synchronous>, transform_indices = @transform_2, window_bounds = array<i64: 16, 128>}, {transform_indices = @transform_3, window_bounds = array<i64: 2, 128>}]} {
    %c0 = arith.constant 0 : index
    %c0_0 = arith.constant 0 : index
    %0 = vector.load %arg1[%c0, %c0_0] : memref<32x32xf32, #tpu.memory_space<vmem>>, vector<32x32xf32>
    %cst = arith.constant 0.000000e+00 : f32
    %1 = vector.broadcast %cst : f32 to vector<3x32xf32>
    %2 = tpu.concatenate %0, %1 in 0 : vector<32x32xf32>, vector<3x32xf32> -> vector<35x32xf32>
    %3 = vector.extract_strided_slice %2 {offsets = [0, 0], sizes = [32, 32], strides = [1, 1]} : vector<35x32xf32> to vector<32x32xf32>
    %4 = vector.extract_strided_slice %2 {offsets = [1, 0], sizes = [32, 32], strides = [1, 1]} : vector<35x32xf32> to vector<32x32xf32>
    %5 = vector.extract_strided_slice %2 {offsets = [2, 0], sizes = [32, 32], strides = [1, 1]} : vector<35x32xf32> to vector<32x32xf32>
    %6 = vector.extract_strided_slice %2 {offsets = [3, 0], sizes = [32, 32], strides = [1, 1]} : vector<35x32xf32> to vector<32x32xf32>
    %7 = tpu.concatenate %3, %4, %5, %6 in 1 : vector<32x32xf32>, vector<32x32xf32>, vector<32x32xf32>, vector<32x32xf32> -> vector<32x128xf32>
    %8 = arith.truncf %7 : vector<32x128xf32> to vector<32x128xbf16>
    %c0_1 = arith.constant 0 : index
    %c0_2 = arith.constant 0 : index
    %9 = vector.load %arg2[%c0_1, %c0_2] : memref<128x128xbf16, #tpu.memory_space<vmem>>, vector<128x128xbf16>
    %cst_3 = arith.constant dense<0.000000e+00> : vector<32x128xf32>
    %10 = tpu.matmul %8, %9, %cst_3 {dimension_numbers = #tpu.dot_dimension_numbers<[1], [0], [0], [1], [0, 0, 1, 1], [], []>} : vector<32x128xbf16>, vector<128x128xbf16>, vector<32x128xf32> -> vector<32x128xf32>
    %11 = vector.shape_cast %10 : vector<32x128xf32> to vector<2x16x128xf32>
    %c0_4 = arith.constant 0 : index
    %c0_5 = arith.constant 0 : index
    %12 = vector.load %arg3[%c0_4, %c0_5] : memref<16x128xf32, #tpu.memory_space<vmem>>, vector<16x128xf32>
    %13 = vector.shape_cast %12 : vector<16x128xf32> to vector<1x16x128xf32>
    %14 = vector.broadcast %13 : vector<1x16x128xf32> to vector<2x16x128xf32>
    %15 = arith.addf %11, %14 : vector<2x16x128xf32>
    %cst_6 = arith.constant dense<0xFF800000> : vector<2x128xf32>
    %16 = vector.multi_reduction <maximumf>, %15, %cst_6 [1] : vector<2x16x128xf32> to vector<2x128xf32>
    %cst_7 = arith.constant 0.000000e+00 : f32
    %17 = vector.broadcast %cst_7 : f32 to vector<2x128xf32>
    %18 = arith.maximumf %16, %17 : vector<2x128xf32>
    %c0_8 = arith.constant 0 : index
    %c0_9 = arith.constant 0 : index
    %19 = vector.load %arg4[%c0_8, %c0_9] : memref<2x128xf32, #tpu.memory_space<vmem>>, vector<2x128xf32>
    tpu.vector_store %arg4[%c0_8, %c0_9], %18 {strides = array<i32>} : memref<2x128xf32, #tpu.memory_space<vmem>>, vector<2x128xf32>,
    return
  }
  func.func @transform_0(%arg0: i32) -> (i32, i32) {
    %c0_i32 = arith.constant 0 : i32
    %c0_i32_0 = arith.constant 0 : i32
    return %arg0, %c0_i32 : i32, i32
  }
  func.func @transform_1(%arg0: i32) -> (i32, i32) {
    %c0_i32 = arith.constant 0 : i32
    %c0_i32_0 = arith.constant 0 : i32
    %c0_i32_1 = arith.constant 0 : i32
    return %c0_i32, %c0_i32_0 : i32, i32
  }
  func.func @transform_2(%arg0: i32) -> (i32, i32) {
    %c0_i32 = arith.constant 0 : i32
    %c0_i32_0 = arith.constant 0 : i32
    %c0_i32_1 = arith.constant 0 : i32
    return %c0_i32, %c0_i32_0 : i32, i32
  }
  func.func @transform_3(%arg0: i32) -> (i32, i32) {
    %c0_i32 = arith.constant 0 : i32
    %c0_i32_0 = arith.constant 0 : i32
    return %arg0, %c0_i32 : i32, i32
  }
}

</mosaic_0001>

<bundles_post_ra>
// kernel: cnn_encoder_forward.1
= control target key start
LH: loop header
LB: loop body
LE: loop exit
PB: predicated region body
PF: predicated region fallthrough
CT: control target
= control target key end

     0   :  { %8 = vsyncpa [#allocation3], 0  ;;  %s566_s0 = inlined_call_operand.hbm [shape: f32[32,32], index: 0, kind: input, shape index: {}]   ;;  %s567_s1 = inlined_call_operand.hbm [shape: bf16[128,128], index: 1, kind: input, shape index: {}]   ;;  %s568_s2 = inlined_call_operand.hbm [shape: f32[16,128], index: 2, kind: input, shape index: {}]   ;;  %s569_s3 = inlined_call_operand.hbm [shape: f32[2,128], index: 3, kind: output, shape index: {}]  }
   0x1   :  { %9 = vsyncpa [#allocation6], 0 }
   0x2   :  { %10 = vsyncpa [#allocation4], 0  ;;  %s479_s12 = smov [#allocation5]  }
   0x3   :  { %s28_s13 = sshll.u32 %s479_s12, 4  ;;  %s29_s13 = int_to_ptr.vmem [resolvable:$true] %s28_s13 }
   0x4   :  { %s401_s14 = scalar_lea.vmem %s29_s13, 1024  ;;  %p406_p1 = scmp.lt.s32.totalorder %s29_s13, %s29_s13 }
   0x5   :  { %p402_p0 = scmp.ne.s32.totalorder %s29_s13, %s401_s14  ;;  %p407_p2 = scmp.lt.s32.totalorder %s401_s14, %s401_s14 }
   0x7   :  { %p408_p3 = por %p407_p2, %p406_p1 }
   0x9   :  { %p409_p4 = pnand %p408_p3, %p402_p0 }
   0xb   :  { %412 = shalt.err (!%p409_p4)
}
   0xc   :  { %s480_s15 = smov 64   ;;  %s481_s16 = smov 4  }
   0xd   :  { %34 = dma.hbm_to_vmem [thread:$0]  %s567_s1, 1024, %s29_s13, [#allocation6], %s480_s15, %s480_s15, %s481_s16  }
   0xe   :  { %s482_s19 = smov [#allocation2]  }
   0xf   :  { %s16_s20 = sshll.u32 %s482_s19, 4  ;;  %s17_s20 = int_to_ptr.vmem [resolvable:$true] %s16_s20 }
  0x10   :  { %s421_s21 = scalar_lea.vmem %s17_s20, 512  ;;  %p426_p6 = scmp.lt.s32.totalorder %s17_s20, %s17_s20 }
  0x11   :  { %p422_p5 = scmp.ne.s32.totalorder %s17_s20, %s421_s21  ;;  %p427_p7 = scmp.lt.s32.totalorder %s421_s21, %s421_s21 }
  0x13   :  { %p428_p8 = por %p427_p7, %p426_p6 }
  0x15   :  { %p429_p9 = pnand %p428_p8, %p422_p5 }
  0x17   :  { %432 = shalt.err (!%p429_p9)
}
  0x18   :  { %s483_s22 = smov 128   ;;  %s484_s23 = smov 8  }
  0x19   :  { %22 = dma.hbm_to_vmem [thread:$0]  %s566_s0, 512, %s17_s20, [#allocation3], %s483_s22, %s483_s22, %s484_s23  }
  0x1a   :  { %s485_s26 = smov [#allocation7]  }
  0x1b   :  { %s40_s27 = sshll.u32 %s485_s26, 4  ;;  %s41_s27 = int_to_ptr.vmem [resolvable:$true] %s40_s27 }
  0x1c   :  { %s441_s1 = scalar_lea.vmem %s41_s27, 256  ;;  %p446_p11 = scmp.lt.s32.totalorder %s41_s27, %s41_s27 }
  0x1d   :  { %p442_p10 = scmp.ne.s32.totalorder %s41_s27, %s441_s1  ;;  %p447_p12 = scmp.lt.s32.totalorder %s441_s1, %s441_s1 }
  0x1f   :  { %p448_p13 = por %p447_p12, %p446_p11 }
  0x21   :  { %p449_p0 = pnand %p448_p13, %p442_p10 }
  0x23   :  { %452 = shalt.err (!%p449_p0)
}
  0x24   :  { %46 = dma.hbm_to_vmem [thread:$0]  %s568_s2, 256, %s41_s27, [#allocation6], %s483_s22, %s483_s22, %s484_s23  }
  0x25   :  { %473 = dma.done.wait [#allocation3], 512  }
  0x26   :  { %474 = vsyncadd [#allocation3], 4294966784 }
  0x27   :  { %475 = dma.done.wait [#allocation6], 1280  }
  0x28   :  { %476 = vsyncadd [#allocation6], 4294966016  ;;  %vm88_vm0 = vcmask 1045504   ;;  %vm66_vm1 = vcmask 1046528   ;;  %v486_v0 = vmov 0.0   ;;  %v521_v2 = vld [vmem:[#allocation2] sm:$0xff] }
  0x29   :  { %v96_v1 = vrot.slane %v486_v0, 2  ;;  %v523_v3 = vld [vmem:[#allocation2 + $0x8] sm:$0xff]  ;;  %v525_v4 = vld [vmem:[#allocation2 + $0x10] sm:$0xff]  ;;  %v74_v5 = vrot.slane %v486_v0, 1  ;;  %vm110_vm2 = vcmask 1044480   ;;  %v118_v6 = vrot.slane %v486_v0, 3 }
  0x2a   :  { %v89_v7 = vrot.slane %v521_v2, 2  ;;  %v90_v8 = vrot.slane %v523_v3, 2  ;;  %v92_v9 = vrot.slane %v525_v4, 2  ;;  %v67_v10 = vrot.slane %v521_v2, 1  ;;  %v531_v11 = vld [vmem:[#allocation2 + $0x18] sm:$0xff]  ;;  %v386_v25 = vld [vmem:[#allocation5 + $0x30] sm:$0xff]  }
  0x2b   :  { %v385_v12 = vld [vmem:[#allocation5 + $0x38] sm:$0xff]   ;;  %v68_v13 = vrot.slane %v523_v3, 1  ;;  %v70_v14 = vrot.slane %v525_v4, 1  ;;  %v94_v15 = vrot.slane %v531_v11, 2  ;;  %v72_v16 = vrot.slane %v531_v11, 1  ;;  %v387_v30 = vld [vmem:[#allocation5 + $0x28] sm:$0xff]  }
  0x2c   :  { %v91_v17 = vsel %vm88_vm0, %v89_v7, %v90_v8  ;;  %v93_v18 = vsel %vm88_vm0, %v90_v8, %v92_v9  ;;  %v114_v19 = vrot.slane %v525_v4, 3  ;;  %v116_v20 = vrot.slane %v531_v11, 3  ;;  %324 = vmatprep.subr.bf16.mxu0 %v385_v12  ;;  %s487_s0 = smov 32   ;;  %v388_v39 = vld [vmem:[#allocation5 + $0x20] sm:$0xff]   ;;  %v389_v42 = vld [vmem:[#allocation5 + $0x18] sm:$0xff]   ;;  %s488_s2 = smov 96  }
  0x2d   :  { %v365_v21 = vpack.i.bf16 %v93_v18, %v91_v17  ;;  %v69_v22 = vsel %vm66_vm1, %v67_v10, %v68_v13  ;;  %v71_v23 = vsel %vm66_vm1, %v68_v13, %v70_v14  ;;  %v95_v24 = vsel %vm88_vm0, %v92_v9, %v94_v15  ;;  %325 = vmatpush3.bf16.msra.mxu0 %v385_v12  ;;  %v390_v43 = vld [vmem:[#allocation5 + $0x10] sm:$0xff]   ;;  %v391_v44 = vld [vmem:[#allocation5 + $0x8] sm:$0xff]   ;;  %v392_v45 = vld [vmem:[#allocation5] sm:$0xff]   ;;  %s489_s30 = smov [#allocation8]  }
  0x2e   :  { %v355_v26 = vpack.i.bf16 %v71_v23, %v69_v22  ;;  %v97_v27 = vsel %vm88_vm0, %v94_v15, %v96_v1  ;;  %v73_v28 = vsel %vm66_vm1, %v70_v14, %v72_v16  ;;  %v75_v29 = vsel %vm66_vm1, %v72_v16, %v74_v5  ;;  %326 = vmatprep.subr.bf16.mxu0 %v386_v25  ;;  %v262_v15 = vld [vmem:[#allocation7] sm:$0xff]  ;;  %v263_v17 = vld [vmem:[#allocation7 + $0x8] sm:$0xff]  ;;  %s296_s4 = sshll.u32 %s489_s30, 4  ;;  %s297_s4 = int_to_ptr.vmem [resolvable:$true] %s296_s4 }
  0x2f   :  { %366 = vrot.lane.b32.xlu1 %v365_v21, %s480_s15  ;;  %v370_v31 = vpack.i.bf16 %v97_v27, %v95_v24  ;;  %v360_v32 = vpack.i.bf16 %v75_v29, %v73_v28  ;;  %v117_v33 = vsel %vm110_vm2, %v114_v19, %v116_v20  ;;  %v119_v34 = vsel %vm110_vm2, %v116_v20, %v118_v6  ;;  %s453_s5 = scalar_lea.vmem %s297_s4, 32  ;;  %p458_p2 = scmp.lt.s32.totalorder %s297_s4, %s297_s4 }
  0x30   :  { %356 = vrot.lane.b32.xlu0 %v355_v26, %s487_s0  ;;  %v111_v35 = vrot.slane %v521_v2, 3  ;;  %v112_v36 = vrot.slane %v523_v3, 3  ;;  %v380_v40 = vpack.i.bf16 %v119_v34, %v117_v33  ;;  %vm132_vm3 = vcmask 261120   ;;  %p454_p1 = scmp.ne.s32.totalorder %s297_s4, %s453_s5  ;;  %p459_p3 = scmp.lt.s32.totalorder %s453_s5, %s453_s5 }
  0x31   :  { %327 = vmatpush3.bf16.msra.mxu0 %v386_v25  ;;  %vm137_vm4 = vcmask 523264   ;;  %vm142_vm5 = vcmask 785408   ;;  %vm286_vm6 = vcmask 1041409  }
  0x32   :  { %v113_v37 = vsel %vm110_vm2, %v111_v35, %v112_v36  ;;  %v115_v38 = vsel %vm110_vm2, %v112_v36, %v114_v19  ;;  %328 = vmatprep.subr.bf16.mxu0 %v387_v30  ;;  %p460_p4 = por %p459_p3, %p458_p2 }
  0x33   :  { %371 = vrot.lane.b32.xlu1 %v370_v31, %s480_s15  ;;  %v375_v41 = vpack.i.bf16 %v115_v38, %v113_v37 }
  0x34   :  { %361 = vrot.lane.b32.xlu0 %v360_v32, %s487_s0  ;;  %p461_p5 = pnand %p460_p4, %p454_p1 }
  0x35   :  { %329 = vmatpush3.bf16.msra.mxu0 %v387_v30 }
  0x36   :  { %330 = vmatprep.subr.bf16.mxu0 %v388_v39 }
  0x37   :  { %381 = vrot.lane.b32.xlu1 %v380_v40, %s488_s2 }
  0x38   :  { %376 = vrot.lane.b32.xlu0 %v375_v41, %s488_s2 }
  0x39   :  { %331 = vmatpush3.bf16.msra.mxu0 %v388_v39 }
  0x3a   :  { %332 = vmatprep.subr.bf16.mxu0 %v389_v42 }
  0x3d   :  { %333 = vmatpush3.bf16.msra.mxu0 %v389_v42 }
  0x3e   :  { %334 = vmatprep.subr.bf16.mxu0 %v390_v43 }
  0x41   :  { %335 = vmatpush3.bf16.msra.mxu0 %v390_v43 }
  0x42   :  { %336 = vmatprep.subr.bf16.mxu0 %v391_v44 }
  0x45   :  { %337 = vmatpush3.bf16.msra.mxu0 %v391_v44 }
  0x46   :  { %338 = vmatprep.subr.bf16.mxu0 %v392_v45 }
  0x49   :  { %339 = vmatpush3.bf16.msra.mxu0 %v392_v45 }
  0xa1   :  { %v367_v46 = vpop.permute.xlu1 %366 }
  0xa2   :  { %v357_v47 = vpop.permute.xlu0 %356  ;;  %v369_v56 = vunpack.i.h.bf16 %v367_v46  ;;  %v368_v57 = vunpack.i.l.bf16 %v367_v46 }
  0xa3   :  { %v359_v48 = vunpack.i.h.bf16 %v357_v47  ;;  %v358_v49 = vunpack.i.l.bf16 %v357_v47 }
  0xa5   :  { %v372_v50 = vpop.permute.xlu1 %371  ;;  %v133_v61 = vsel %vm132_vm3, %v521_v2, %v358_v49  ;;  %v134_v62 = vsel %vm132_vm3, %v523_v3, %v359_v48 }
  0xa6   :  { %v362_v51 = vpop.permute.xlu0 %361  ;;  %v374_v52 = vunpack.i.h.bf16 %v372_v50  ;;  %v373_v53 = vunpack.i.l.bf16 %v372_v50  ;;  %v138_v9 = vsel %vm137_vm4, %v133_v61, %v368_v57  ;;  %v139_v10 = vsel %vm137_vm4, %v134_v62, %v369_v56 }
  0xa7   :  { %v364_v54 = vunpack.i.h.bf16 %v362_v51  ;;  %v363_v55 = vunpack.i.l.bf16 %v362_v51 }
  0xa9   :  { %v136_v58 = vsel %vm132_vm3, %v531_v11, %v364_v54  ;;  %v135_v59 = vsel %vm132_vm3, %v525_v4, %v363_v55  ;;  %v382_v60 = vpop.permute.xlu1 %381 }
  0xaa   :  { %v384_v63 = vunpack.i.h.bf16 %v382_v60  ;;  %v383_v0 = vunpack.i.l.bf16 %v382_v60  ;;  %v377_v1 = vpop.permute.xlu0 %376  ;;  %v140_v7 = vsel %vm137_vm4, %v135_v59, %v373_v53  ;;  %v141_v8 = vsel %vm137_vm4, %v136_v58, %v374_v52 }
  0xab   :  { %v379_v5 = vunpack.i.h.bf16 %v377_v1  ;;  %v378_v6 = vunpack.i.l.bf16 %v377_v1 }
  0xac   :  { %v145_v12 = vsel %vm142_vm5, %v140_v7, %v383_v0  ;;  %v146_v11 = vsel %vm142_vm5, %v141_v8, %v384_v63 }
  0xad   :  { %v143_v4 = vsel %vm142_vm5, %v138_v9, %v378_v6  ;;  %v144_v13 = vsel %vm142_vm5, %v139_v10, %v379_v5  ;;  %v148_v2 = vpack.c.bf16 %v146_v11, %v145_v12 }
  0xae   :  { %v147_v14 = vpack.c.bf16 %v144_v13, %v143_v4 }
  0xb0   :  { %340 = vmatprep.mubr.bf16.mxu0 %v147_v14 }
  0xb1   :  { %341 = vmatmul.mubr.bf16.vlgmr.msra.gmra.mxu0 %v148_v2 }
 0x171   :  { %v342_v3 = vpop.f32.mrf.mxu0 }
 0x172   :  { %v266_v19 = vadd.f32 %v342_v3, %v262_v15 }
 0x173   :  { %v247_v16 = vpop.f32.mrf.mxu0 }
 0x174   :  { %v264_v22 = vadd.f32 %v262_v15, %v247_v16 }
 0x175   :  { %v343_v18 = vpop.f32.mrf.mxu0 }
 0x176   :  { %v267_v20 = vadd.f32 %v343_v18, %v263_v17 }
 0x177   :  { %v250_v21 = vpop.f32.mrf.mxu0 }
 0x178   :  { %v275_v23 = vmax.f32 %v266_v19, %v267_v20  ;;  %v265_v24 = vadd.f32 %v263_v17, %v250_v21 }
 0x17a   :  { %v276_v25 = vrot.slane %v275_v23, 4  ;;  %v268_v26 = vmax.f32 %v264_v22, %v265_v24 }
 0x17c   :  { %v277_v27 = vmax.f32 %v275_v23, %v276_v25  ;;  %v269_v28 = vrot.slane %v268_v26, 4 }
 0x17e   :  { %v278_v29 = vrot.slane %v277_v27, 2  ;;  %v270_v30 = vmax.f32 %v268_v26, %v269_v28 }
 0x180   :  { %v279_v31 = vmax.f32 %v277_v27, %v278_v29  ;;  %v271_v32 = vrot.slane %v270_v30, 2 }
 0x182   :  { %v280_v33 = vrot.slane %v279_v31, 1  ;;  %v272_v34 = vmax.f32 %v270_v30, %v271_v32 }
 0x184   :  { %v273_v35 = vrot.slane %v272_v34, 1  ;;  %v281_v36 = vmax.f32 %v279_v31, %v280_v33 }
 0x186   :  { %v274_v37 = vmax.f32 %v272_v34, %v273_v35  ;;  %v283_v39 = vmax.f32 %v281_v36, 0.0 }
 0x188   :  { %v282_v38 = vmax.f32 %v274_v37, 0.0 }
 0x18a   :  { %v287_v40 = vsel %vm286_vm6, %v283_v39, %v282_v38 }
 0x18b   :  { %289 = vst [vmem:[#allocation8] sm:$0x3] %v287_v40 }
 0x18c   :  { %464 = shalt.err (!%p461_p5)
}
 0x18d   :  { %299 = dma.vmem_to_hbm [thread:$0]  %s297_s4, 32, %s569_s3, [#allocation4]  }
 0x18e   :  { %477 = dma.done.wait [#allocation4], 32  }
 0x18f   :  { %478 = vsyncadd [#allocation4], 4294967264 }
 0x190   :  { %303 = vsyncpa [#allocation3], 1 }
 0x191   :  { %304 = vsyncpa [#allocation6], 1 }
 0x192   :  { %305 = vsyncpa [#allocation4], 1 }

</bundles_post_ra>
